<compile_context>
chip_gen: v5e
topology: v5e:2x2
jax: 0.10.0
libtpu: 0.0.40
codegen_flags: <defaults>
</compile_context>

<pallas_src>
import jax
import jax.numpy as jnp
from jax.experimental import pallas as pl
from jax.experimental.pallas import tpu as pltpu


# ----------------------------------------------------------------------------
# Kernel
# ----------------------------------------------------------------------------
def _ff_kernel(x_ref, w13_ref, w2_ref, o_ref, acc_ref):
    # x_ref:   (tm, dim)       activation row tile (same block for every hidden step)
    # w13_ref: (dim, 2*th)     fused [W1^T | W3^T] hidden slice (one DMA, one MXU pass)
    # w2_ref:  (th, dim)       W2^T hidden slice (down projection)
    # o_ref:   (tm, dim)       output row tile (written on the last hidden step)
    # acc_ref: (tm, dim) f32   down-projection accumulator (VMEM scratch)
    j = pl.program_id(1)
    th = w2_ref.shape[0]

    x = x_ref[...]
    # Fused gate + up projection: one weight stream, one MXU issue sequence.
    h = jnp.dot(x, w13_ref[...], preferred_element_type=jnp.float32)   # (tm, 2*th)
    h1 = h[:, :th]              # gate  (static, lane-aligned slice when th % 128 == 0)
    h3 = h[:, th:]              # up
    gated = (h1 * jax.nn.sigmoid(h1)) * h3                             # SiLU(h1)*h3 in f32
    partial = jnp.dot(gated.astype(w2_ref.dtype), w2_ref[...],
                      preferred_element_type=jnp.float32)              # (tm, dim)

    @pl.when(j == 0)
    def _():
        acc_ref[...] = partial        # write first partial directly (no zero + RMW pass)

    @pl.when(j > 0)
    def _():
        acc_ref[...] += partial

    @pl.when(j == pl.num_programs(1) - 1)
    def _():
        o_ref[...] = acc_ref[...].astype(o_ref.dtype)


# ----------------------------------------------------------------------------
# Tile / VMEM heuristics (generation aware)
# ----------------------------------------------------------------------------
_TM_CANDIDATES = (1024, 768, 512, 384, 256, 192, 128, 96, 64, 48, 32, 24, 16, 8)
_TH_CANDIDATES = (1024, 512, 256, 128)


def _vmem_capacity_bytes():
    """Physical VMEM of the local chip; conservative fallback if undetectable."""
    try:
        cap = int(pltpu.get_tpu_info().vmem_capacity_bytes)
        if cap > 0:
            return cap
    except Exception:
        pass
    try:
        kind = jax.devices()[0].device_kind.lower()
    except Exception:
        kind = ""
    # v7x has 64 MiB per TensorCore; v5e/v6e (and older) have 128 MiB.
    return 64 * 2**20 if "v7" in kind else 128 * 2**20


def _vmem_budget_bytes():
    # Leave ~15% headroom for Mosaic internal scratch (≈56 MiB on v7x,
    # ≈108 MiB on v5e/v6e).
    return int(0.85 * _vmem_capacity_bytes())


def _vmem_estimate(tm, th, dim, itemsize):
    """Double-buffered x / w13 / w2 / out blocks + f32 accumulator + f32 temporaries."""
    io = 2 * (tm * dim + dim * 2 * th + th * dim + tm * dim) * itemsize
    acc = tm * dim * 4
    tmp = (tm * 2 * th + tm * th) * 4     # h and gated live in f32
    return io + acc + tmp


def _aligned_divisors(total, align, cands):
    out = [t for t in cands if t <= total and total % t == 0 and t % align == 0]
    return out if out else [total]


def choose_tiles(seq, dim, hidden, dtype):
    """Pick (tm, th): largest row tile first (arithmetic intensity vs weight
    re-streaming), then largest hidden tile, constrained to the VMEM budget."""
    itemsize = jnp.dtype(dtype).itemsize
    sub_align = max(8, 32 // itemsize)
    budget = _vmem_budget_bytes()
    tm_cands = _aligned_divisors(seq, sub_align, _TM_CANDIDATES)
    th_cands = _aligned_divisors(hidden, 128, _TH_CANDIDATES)
    for tm in tm_cands:
        if seq >= 512 and seq // tm < 2:
            continue                      # keep >=2 seq tiles so megacore stays busy
        for th in th_cands:
            if _vmem_estimate(tm, th, dim, itemsize) <= budget:
                return tm, th
    return tm_cands[-1], th_cands[-1]


# ----------------------------------------------------------------------------
# Weight preparation (one-time, at load — NOT per forward call)
# ----------------------------------------------------------------------------
def prepare_weights(w1, w2, w3, *, th):
    """w1, w3: [hidden, dim] (PyTorch Linear [out, in] layout); w2: [dim, hidden].

    Returns:
      w13_blocks: [hidden//th, dim, 2*th]  block j = [W1^T[:, j*th:(j+1)*th] | W3^T[:, ...]]
                  (fused gate+up, pre-blocked so every grid step is one contiguous DMA)
      w2_blocks:  [hidden//th, th, dim]    block j = W2^T[j*th:(j+1)*th, :]
    """
    hidden, dim = w1.shape
    assert w3.shape == (hidden, dim) and w2.shape == (dim, hidden)
    assert hidden % th == 0, "hidden must be divisible by the hidden tile th"
    n = hidden // th
    w1b = jnp.transpose(w1.T.reshape(dim, n, th), (1, 0, 2))   # (n, dim, th)
    w3b = jnp.transpose(w3.T.reshape(dim, n, th), (1, 0, 2))   # (n, dim, th)
    w13_blocks = jnp.concatenate([w1b, w3b], axis=-1)          # (n, dim, 2*th)
    w2_blocks = w2.T.reshape(n, th, dim)                       # (n, th, dim)
    return w13_blocks, w2_blocks


# ----------------------------------------------------------------------------
# Forward pass
# ----------------------------------------------------------------------------
def feed_forward(x, w13_blocks, w2_blocks, *, tm=None):
    """x: [seq, dim]; w13_blocks: [hidden//th, dim, 2*th]; w2_blocks: [hidden//th, th, dim]."""
    seq, dim = x.shape
    n_h, dim_w, two_th = w13_blocks.shape
    th = two_th // 2
    hidden = n_h * th
    assert dim_w == dim and two_th == 2 * th
    assert w2_blocks.shape == (n_h, th, dim)

    itemsize = jnp.dtype(x.dtype).itemsize
    sub_align = max(8, 32 // itemsize)
    budget = _vmem_budget_bytes()

    if tm is None:
        tm_cands = _aligned_divisors(seq, sub_align, _TM_CANDIDATES)
        tm = tm_cands[-1]
        for t in tm_cands:
            if seq >= 512 and seq // t < 2:
                continue
            if _vmem_estimate(t, th, dim, itemsize) <= budget:
                tm = t
                break
    assert seq % tm == 0, "seq must be divisible by the row tile tm"
    if tm != seq:
        assert tm % sub_align == 0, "tm must respect the sublane minimum"

    need = _vmem_estimate(tm, th, dim, itemsize)
    vmem_limit = int(min(budget, max(32 * 2**20, int(1.25 * need))))

    n_seq_tiles = seq // tm
    cost = pl.CostEstimate(
        flops=6 * seq * dim * hidden,              # three seq x dim x hidden matmuls
        transcendentals=seq * hidden,              # sigmoid in SiLU
        bytes_accessed=(2 * seq * dim) * itemsize  # x in + out
        + 3 * dim * hidden * itemsize * n_seq_tiles,  # weights re-streamed per seq tile
    )

    grid = (n_seq_tiles, n_h)
    return pl.pallas_call(
        _ff_kernel,
        out_shape=jax.ShapeDtypeStruct((seq, dim), x.dtype),
        grid_spec=pltpu.PrefetchScalarGridSpec(
            num_scalar_prefetch=0,
            grid=grid,
            in_specs=[
                pl.BlockSpec((tm, dim), lambda i, j: (i, 0)),            # x row tile
                pl.BlockSpec((None, dim, two_th), lambda i, j: (j, 0, 0)),  # fused [W1^T|W3^T] slice
                pl.BlockSpec((None, th, dim), lambda i, j: (j, 0, 0)),      # W2^T slice
            ],
            out_specs=pl.BlockSpec((tm, dim), lambda i, j: (i, 0)),
            scratch_shapes=[pltpu.VMEM((tm, dim), jnp.float32)],
        ),
        compiler_params=pltpu.CompilerParams(
            dimension_semantics=("parallel", "arbitrary"),
            vmem_limit_bytes=vmem_limit,
        ),
        cost_estimate=cost,
    )(x, w13_blocks, w2_blocks)


def feed_forward_ref(x, w1, w2, w3):
    """Pure-JAX reference, PyTorch Linear layouts: w1,w3:[hidden,dim], w2:[dim,hidden]."""
    h1 = jnp.dot(x, w1.T, preferred_element_type=jnp.float32)
    h3 = jnp.dot(x, w3.T, preferred_element_type=jnp.float32)
    g = h1 * jax.nn.sigmoid(h1) * h3
    out = jnp.dot(g.astype(w2.dtype), w2.T, preferred_element_type=jnp.float32)
    return out.astype(x.dtype)


if __name__ == "__main__":
    # Small Mistral-like (scaled-down) shapes: dim=128, hidden_dim=512, seq=256.
    seq, dim, hidden = 256, 128, 512

    key = jax.random.PRNGKey(0)
    kx, k1, k2, k3 = jax.random.split(key, 4)

    x = jax.random.normal(kx, (seq, dim), dtype=jnp.float32)
    # Deterministic synthetic weights in PyTorch Linear layout [out, in].
    w1 = jax.random.normal(k1, (hidden, dim), dtype=jnp.float32) * 0.02
    w2 = jax.random.normal(k2, (dim, hidden), dtype=jnp.float32) * 0.02
    w3 = jax.random.normal(k3, (hidden, dim), dtype=jnp.float32) * 0.02

    # --- f32 path, explicit small tiles to exercise the full 2x4 grid --------
    w13_blk, w2_blk = prepare_weights(w1, w2, w3, th=128)
    out = jax.block_until_ready(feed_forward(x, w13_blk, w2_blk, tm=128))
    ref = feed_forward_ref(x, w1, w2, w3)
    assert out.shape == (seq, dim)
    assert jnp.allclose(out, ref, atol=1e-4, rtol=1e-4), "f32 mismatch vs reference"

    # --- bf16 path, generation/VMEM-aware auto tiles --------------------------
    xb = x.astype(jnp.bfloat16)
    w1h, w2h, w3h = (w.astype(jnp.bfloat16) for w in (w1, w2, w3))
    tm_auto, th_auto = choose_tiles(seq, dim, hidden, jnp.bfloat16)
    w13_blk_b, w2_blk_b = prepare_weights(w1h, w2h, w3h, th=th_auto)
    out_b = jax.block_until_ready(feed_forward(xb, w13_blk_b, w2_blk_b, tm=tm_auto))
    ref_b = feed_forward_ref(xb, w1h, w2h, w3h)
    assert out_b.shape == (seq, dim)
    assert jnp.allclose(out_b.astype(jnp.float32), ref_b.astype(jnp.float32),
                        atol=2e-2, rtol=5e-2), "bf16 mismatch vs reference"

    print("KERNEL_OK")
</pallas_src>

<mosaic_0001>
module attributes {stable_mosaic.version = 11 : i64} {
  func.func @_ff_kernel(%arg0: i32, %arg1: i32, %arg2: memref<128x128xf32, #tpu.memory_space<vmem>>, %arg3: memref<1x128x256xf32, #tpu.memory_space<vmem>>, %arg4: memref<1x128x128xf32, #tpu.memory_space<vmem>>, %arg5: memref<128x128xf32, #tpu.memory_space<vmem>>, %arg6: memref<128x128xf32, #tpu.memory_space<vmem>>) attributes {dimension_semantics = [#tpu.dimension_semantics<parallel>, #tpu.dimension_semantics<arbitrary>], iteration_bounds = array<i64: 2, 4>, scalar_prefetch = 0 : i64, scratch_operands = 1 : i64, tpu.core_type = #tpu.core_type<tc>, window_params = [{transform_indices = @transform_0, window_bounds = array<i64: 128, 128>}, {transform_indices = @transform_1, window_bounds = array<i64: 1, 128, 256>}, {transform_indices = @transform_2, window_bounds = array<i64: 1, 128, 128>}, {transform_indices = @transform_3, window_bounds = array<i64: 128, 128>}]} {
    %c0 = arith.constant 0 : index
    %c0_0 = arith.constant 0 : index
    %0 = vector.load %arg2[%c0, %c0_0] : memref<128x128xf32, #tpu.memory_space<vmem>>, vector<128x128xf32>
    %c0_1 = arith.constant 0 : index
    %c0_2 = arith.constant 0 : index
    %c0_3 = arith.constant 0 : index
    %1 = vector.load %arg3[%c0_1, %c0_2, %c0_3] : memref<1x128x256xf32, #tpu.memory_space<vmem>>, vector<1x128x256xf32>
    %2 = vector.shape_cast %1 : vector<1x128x256xf32> to vector<128x256xf32>
    %cst = arith.constant dense<0.000000e+00> : vector<128x256xf32>
    %3 = tpu.matmul %0, %2, %cst {dimension_numbers = #tpu.dot_dimension_numbers<[1], [0], [0], [1], [0, 0, 1, 1], [], []>} : vector<128x128xf32>, vector<128x256xf32>, vector<128x256xf32> -> vector<128x256xf32>
    %4 = vector.extract_strided_slice %3 {offsets = [0, 0], sizes = [128, 128], strides = [1, 1]} : vector<128x256xf32> to vector<128x128xf32>
    %5 = vector.extract_strided_slice %3 {offsets = [0, 128], sizes = [128, 128], strides = [1, 1]} : vector<128x256xf32> to vector<128x128xf32>
    %6 = arith.negf %4 : vector<128x128xf32>
    %7 = math.exp %6 : vector<128x128xf32>
    %cst_4 = arith.constant 1.000000e+00 : f32
    %8 = vector.broadcast %cst_4 : f32 to vector<128x128xf32>
    %9 = arith.addf %8, %7 : vector<128x128xf32>
    %10 = arith.divf %8, %9 : vector<128x128xf32>
    %11 = arith.mulf %4, %10 : vector<128x128xf32>
    %12 = arith.mulf %11, %5 : vector<128x128xf32>
    %c0_5 = arith.constant 0 : index
    %c0_6 = arith.constant 0 : index
    %c0_7 = arith.constant 0 : index
    %13 = vector.load %arg4[%c0_5, %c0_6, %c0_7] : memref<1x128x128xf32, #tpu.memory_space<vmem>>, vector<1x128x128xf32>
    %14 = vector.shape_cast %13 : vector<1x128x128xf32> to vector<128x128xf32>
    %cst_8 = arith.constant dense<0.000000e+00> : vector<128x128xf32>
    %15 = tpu.matmul %12, %14, %cst_8 {dimension_numbers = #tpu.dot_dimension_numbers<[1], [0], [0], [1], [0, 0, 1, 1], [], []>} : vector<128x128xf32>, vector<128x128xf32>, vector<128x128xf32> -> vector<128x128xf32>
    %c0_i32 = arith.constant 0 : i32
    %16 = arith.cmpi eq, %arg1, %c0_i32 : i32
    %17 = arith.extui %16 : i1 to i32
    %c0_i32_9 = arith.constant 0 : i32
    %18 = arith.cmpi ne, %17, %c0_i32_9 : i32
    scf.if %18 {
      %c0_13 = arith.constant 0 : index
      %c0_14 = arith.constant 0 : index
      %25 = vector.load %arg6[%c0_13, %c0_14] : memref<128x128xf32, #tpu.memory_space<vmem>>, vector<128x128xf32>
      tpu.vector_store %arg6[%c0_13, %c0_14], %15 {strides = array<i32>} : memref<128x128xf32, #tpu.memory_space<vmem>>, vector<128x128xf32>,
    } else {
    }
    %c0_i32_10 = arith.constant 0 : i32
    %19 = arith.cmpi sgt, %arg1, %c0_i32_10 : i32
    %20 = arith.extui %19 : i1 to i32
    %c0_i32_11 = arith.constant 0 : i32
    %21 = arith.cmpi ne, %20, %c0_i32_11 : i32
    scf.if %21 {
      %c0_13 = arith.constant 0 : index
      %c0_14 = arith.constant 0 : index
      %25 = vector.load %arg6[%c0_13, %c0_14] : memref<128x128xf32, #tpu.memory_space<vmem>>, vector<128x128xf32>
      %26 = arith.addf %25, %15 : vector<128x128xf32>
      %c0_15 = arith.constant 0 : index
      %c0_16 = arith.constant 0 : index
      %27 = vector.load %arg6[%c0_15, %c0_16] : memref<128x128xf32, #tpu.memory_space<vmem>>, vector<128x128xf32>
      tpu.vector_store %arg6[%c0_15, %c0_16], %26 {strides = array<i32>} : memref<128x128xf32, #tpu.memory_space<vmem>>, vector<128x128xf32>,
    } else {
    }
    %c3_i32 = arith.constant 3 : i32
    %22 = arith.cmpi eq, %arg1, %c3_i32 : i32
    %23 = arith.extui %22 : i1 to i32
    %c0_i32_12 = arith.constant 0 : i32
    %24 = arith.cmpi ne, %23, %c0_i32_12 : i32
    scf.if %24 {
      %c0_13 = arith.constant 0 : index
      %c0_14 = arith.constant 0 : index
      %25 = vector.load %arg6[%c0_13, %c0_14] : memref<128x128xf32, #tpu.memory_space<vmem>>, vector<128x128xf32>
      %c0_15 = arith.constant 0 : index
      %c0_16 = arith.constant 0 : index
      %26 = vector.load %arg5[%c0_15, %c0_16] : memref<128x128xf32, #tpu.memory_space<vmem>>, vector<128x128xf32>
      tpu.vector_store %arg5[%c0_15, %c0_16], %25 {strides = array<i32>} : memref<128x128xf32, #tpu.memory_space<vmem>>, vector<128x128xf32>,
    } else {
    }
    return
  }
  func.func @transform_0(%arg0: i32, %arg1: i32) -> (i32, i32) {
    %c0_i32 = arith.constant 0 : i32
    %c0_i32_0 = arith.constant 0 : i32
    return %arg0, %c0_i32 : i32, i32
  }
  func.func @transform_1(%arg0: i32, %arg1: i32) -> (i32, i32, i32) {
    %c0_i32 = arith.constant 0 : i32
    %c0_i32_0 = arith.constant 0 : i32
    %c0_i32_1 = arith.constant 0 : i32
    return %arg1, %c0_i32, %c0_i32_0 : i32, i32, i32
  }
  func.func @transform_2(%arg0: i32, %arg1: i32) -> (i32, i32, i32) {
    %c0_i32 = arith.constant 0 : i32
    %c0_i32_0 = arith.constant 0 : i32
    %c0_i32_1 = arith.constant 0 : i32
    return %arg1, %c0_i32, %c0_i32_0 : i32, i32, i32
  }
  func.func @transform_3(%arg0: i32, %arg1: i32) -> (i32, i32) {
    %c0_i32 = arith.constant 0 : i32
    %c0_i32_0 = arith.constant 0 : i32
    return %arg0, %c0_i32 : i32, i32
  }
}

</mosaic_0001>

<bundles_post_ra>
// kernel: tpu_custom_call.1
= control target key start
LH: loop header
LB: loop body
LE: loop exit
PB: predicated region body
PF: predicated region fallthrough
CT: control target
= control target key end

     0   :  { %s2277_s0 = inlined_call_operand.hbm [shape: f32[256,128], index: 0, kind: input, shape index: {}]   ;;  %s2278_s1 = inlined_call_operand.hbm [shape: f32[4,128,256], index: 1, kind: input, shape index: {}]   ;;  %s2279_s2 = inlined_call_operand.hbm [shape: f32[4,128,128], index: 2, kind: input, shape index: {}]   ;;  %s2280_s3 = inlined_call_operand.hbm [shape: f32[256,128], index: 3, kind: output, shape index: {}]  }
   0x1   :  { %2291 = sst [smem:[#allocation23_spill]] %s2278_s1 }
   0x2   :  { %2292 = sst [smem:[#allocation24_spill]] %s2280_s3 }
   0x3   :  { %8 = vsyncpa [#allocation4], 0 }
   0x4   :  { %10 = vsyncpa [#allocation4 + $0x1], 0 }
   0x5   :  { %11 = vsyncpa [#allocation7], 0 }
   0x6   :  { %13 = vsyncpa [#allocation7 + $0x1], 0 }
   0x7   :  { %14 = vsyncpa [#allocation5], 0 }
   0x8   :  { %16 = vsyncpa [#allocation5 + $0x1], 0  ;;  %s1652_s12 = smov 0   ;;  %s1654_s13 = smov 0  }
   0x9   :  { %s1656_s14 = smov 0   ;;  %s1658_s15 = smov 0  }
   0xa   :  { %s1660_s16 = smov 0   ;;  %s1662_s17 = smov 0  }
   0xb   :  { %s1664_s18 = smov 0   ;;  %s1666_s19 = smov 0  }
   0xc   :  { %s1668_s20 = smov 0   ;;  %s1670_s21 = smov 0  }
   0xd   :  { %s1672_s22 = smov 0  }
   0xe LB: > { %2293 = sst [smem:[#allocation13_spill]] %s1592_s14  ;;  %s1706_s23 = sadd.s32 4294967295, %s1624_s22   ;;  %s1624_s22 = sphi %s1672_s22, %s22_s22   ;;  %s1620_s21 = sphi %s1670_s21, %s2344_s21   ;;  %s1616_s20 = sphi %s1668_s20, %s2351_s20   ;;  %s1612_s19 = sphi %s1666_s19, %s2342_s19   ;;  %s1608_s18 = sphi %s1664_s18, %s2350_s18   ;;  %s1604_s17 = sphi %s1662_s17, %s2349_s17   ;;  %s1600_s16 = sphi %s1660_s16, %s2348_s16   ;;  %s1596_s15 = sphi %s1658_s15, %s2347_s15   ;;  %s1592_s14 = sphi %s1656_s14, %s2340_s14   ;;  %s1588_s13 = sphi %s1654_s13, %s2346_s13   ;;  %s1584_s12 = sphi %s1652_s12, %s2345_s12  }
   0xf   : > { %2294 = sst [smem:[#allocation14_spill]] %s1596_s15  ;;  %s31_s24 = sadd.s32 1, %s1616_s20 }
  0x10   : > { %2295 = sst [smem:[#allocation15_spill]] %s1612_s19  ;;  %p1709_p0 = scmp.ge.s32.totalorder %s31_s24, 4 }
  0x11   : > { %2296 = sst [smem:[#allocation16_spill]] %s1620_s21  ;;  %p49_p1 = scmp.eq.s32.totalorder %s1624_s22, 0 }
  0x12   : > { %p55_p2 = scmp.eq.s32.totalorder %s1706_s23, 0  ;;  %s67_s26 = sadd.s32 1, %s1592_s14 }
  0x13   : > { %s2353_s24 = smov (%p1709_p0, %s31_s24), 0  ;;  %p74_p3 = scmp.ne.s32.totalorder %s1592_s14, %s1588_s13 }
  0x14   : > { %2298 = sst [smem:[#allocation17_spill]] %s2353_s24  ;;  %p80_p4 = scmp.ne.s32.totalorder %s1588_s13, %s1584_s12 }
  0x15   : > { %s64_s27 = ssub.s32 %s1616_s20, %s2353_s24  ;;  %p1727_p6 = por %p74_p3, %p49_p1 }
  0x16   : > { %p65_p5 = scmp.eq.s32.totalorder %s64_s27, 0  ;;  %p1733_p7 = por %p80_p4, %p55_p2 }
  0x17   : > { %p2281_p8 = scmp.lt.s32.totalorder %s1624_s22, 8  ;;  %s178_s4 = sand.u32 1, %s1624_s22  }
  0x18   : > { %s1739_s30 = scalar_select %p65_p5, %s1592_s14, %s67_s26  }
  0x19   : > { %s180_s5 = sand.u32 1, %s1592_s14   ;;  %s1175_s7 = sshll.u32 %s1616_s20, 8 }
  0x1a   : > { %2301 = sst [smem:[#allocation18_spill]] %s1739_s30  ;;  %s1139_s6 = sshll.u32 %s180_s5, 8 }
  0x1b   : > { %s2302_s1 = sld [smem:[#allocation23_spill]]  ;;  %s182_s11 = scalar_lea.vmem [#allocation6], %s1139_s6 }
  0x1c   : > { %s190_s12 = sshll.u32 %s182_s11, 4  ;;  %p1751_p9 = pnand %p2281_p8, %p1727_p6  ;;  %s191_s12 = int_to_ptr.vmem [resolvable:$true] %s190_s12 }
  0x1d   : > { %s1142_s6 = sshll.u32 %s180_s5, 7  ;;  %s1626_s8 = smov 256  }
  0x1e   : > { %s1627_s9 = smov 16   ;;  %p1145_p10 = scmp.ge.s32.totalorder %s1624_s22, 1 }
  0x1f   : > { %s204_s28 = scalar_lea.vmem [#allocation8], %s1142_s6  ;;  %p220_p11 = scmp.lt.s32.totalorder %s1624_s22, 9 }
  0x20   : > { %s34_s5 = sadd.s32 1, %s1620_s21  ;;  %p48_p13 = scmp.ne.s32.totalorder %s1604_s17, %s1600_s16 }
  0x21   : > { %s187_s10 = scalar_lea.hbm %s2302_s1, %s1175_s7  ;;  %s1755_s7 = scalar_lea.sflag [#allocation7], %s178_s4 }
  0x22   : > { %s188_s27 = sshll.u32 %s187_s10, 4  ;;  %s1761_s10 = sshll.u32 %s204_s28, 4  ;;  %s189_s27 = int_to_ptr.hbm [resolvable:$true] %s188_s27  ;;  %s213_s10 = int_to_ptr.vmem [resolvable:$true] %s1761_s10 }
  0x23   : > { %1240 = dma.hbm_to_vmem [thread:$0]  (!%p1751_p9), %s189_s27, 4096, %s191_s12, %s1755_s7, %s1626_s8, %s1626_s8, %s1627_s9  }
  0x24   : > { %p1764_p12 = pnand %p1145_p10, %p220_p11  ;;  %s1133_s4 = sadd.s32 4294967294, %s1624_s22  }
  0x25   : > { %s41_s1 = sadd.s32 1, %s1604_s17  ;;  %s2355_s5 = smov (!%p1709_p0, %s34_s5), %s1620_s21 }
  0x26   : > { %p54_p3 = scmp.ne.s32.totalorder %s1600_s16, %s1596_s15  ;;  %p36_p4 = scmp.ge.s32.totalorder %s2355_s5, 2 }
  0x27   : > { %p130_p5 = scmp.eq.s32.totalorder %s1706_s23, 7  ;;  %p1781_p6 = por %p49_p1, %p48_p13 }
  0x28   : > { %p1787_p10 = por %p55_p2, %p54_p3  ;;  %s2357_s5 = smov (%p36_p4, %s2355_s5), 0 }
  0x29   : > { %2307 = sst [smem:[#allocation19_spill]] %s2357_s5  ;;  %p1793_p0 = por %p130_p5, %p48_p13 }
  0x2a   : > { %p136_p11 = scmp.eq.s32.totalorder %s1133_s4, 7  ;;  %s38_s6 = ssub.s32 %s1620_s21, %s2357_s5 }
  0x2b   : > { %s2308_s25 = scalar_select %p1793_p0, 1, 0 }
  0x2c   : > { %s156_s8 = sand.u32 1, %s1604_s17   ;;  %p39_p1 = scmp.eq.s32.totalorder %s38_s6, 0 }
  0x2d   : > { %2309 = sst [smem:[#allocation20_spill]] %s2308_s25  ;;  %p1800_p8 = por %p136_p11, %p54_p3 }
  0x2e   : > { %s1136_s28 = sshll.u32 %s156_s8, 7  ;;  %s1174_s30 = sshll.u32 %s1620_s21, 7 }
  0x2f   : > { %s2310_s9 = scalar_select %p1800_p8, 1, 0 }
  0x30   : > { %s1805_s24 = scalar_select %p39_p1, %s1604_s17, %s41_s1  }
  0x31   : > { %2311 = sst [smem:[#allocation21_spill]] %s2310_s9  ;;  %s165_s3 = scalar_lea.hbm %s2277_s0, %s1174_s30 }
  0x32   : > { %2312 = sst [smem:[#allocation22_spill]] %s1805_s24  ;;  %s160_s25 = scalar_lea.vmem [#allocation3], %s1136_s28 }
  0x33   : > { %s168_s4 = sshll.u32 %s160_s25, 4  ;;  %s166_s5 = sshll.u32 %s165_s3, 4  ;;  %s169_s4 = int_to_ptr.vmem [resolvable:$true] %s168_s4  ;;  %s167_s5 = int_to_ptr.hbm [resolvable:$true] %s166_s5 }
  0x34   : > { %p2313_p2 = scmp.lt.s32.totalorder %s1624_s22, 8  ;;  %s1176_s6 = sshll.u32 %s1616_s20, 7 }
  0x35   : > { %s157_s9 = scalar_lea.sflag [#allocation4], %s156_s8  ;;  %s1628_s19 = smov 128  }
  0x36   : > { %p1235_p13 = pnand %p2313_p2, %p1781_p6  ;;  %s1629_s1 = smov 8  }
  0x37   : > { %s209_s14 = scalar_lea.hbm %s2279_s2, %s1176_s6  ;;  %224 = sbr.rel (%p1764_p12) target bundleno = 566 (0x236), region = 32 }
  0x38   : > { %1237 = dma.hbm_to_vmem [thread:$0]  (!%p1235_p13), %s167_s5, 2048, %s169_s4, %s157_s9, %s1628_s19, %s1628_s19, %s1629_s1  }
  0x39   : > { %s210_s15 = sshll.u32 %s209_s14, 4  ;;  %s1826_s3 = sand.u32 (!%p1764_p12), 1, %s1600_s16   ;;  %s211_s15 = int_to_ptr.hbm [resolvable:$true] %s210_s15 }
  0x3a   : > { %1243 = dma.hbm_to_vmem [thread:$0]  (!%p1751_p9), %s211_s15, 2048, %s213_s10, %s1755_s7, %s1628_s19, %s1628_s19, %s1629_s1  }
  0x3b   : > { %s1146_s30 = sshll.u32 (!%p1764_p12), %s1826_s3, 7  ;;  %s227_s5 = scalar_lea.sflag (!%p1764_p12), [#allocation4], %s1826_s3 }
  0x3c   : > { %s1832_s21 = scalar_lea.vmem [#allocation3], %s1146_s30 }
  0x3d   : > { %1571 = dma.done.wait (%p1787_p10), %s227_s5, 2048  }
  0x3e   : > { %1573 = vsyncadd (%p1787_p10), %s227_s5, 4294965248  ;;  %s236_s19 = sand.u32 1, %s1706_s23   ;;  %s238_s24 = sand.u32 1, %s1588_s13  }
  0x3f   : > { %s1147_s26 = sshll.u32 %s238_s24, 8  ;;  %s237_s7 = scalar_lea.sflag [#allocation7], %s236_s19 }
  0x40   : > { %s1842_s10 = scalar_lea.vmem [#allocation6], %s1147_s26 }
  0x41   : > { %1575 = dma.done.wait (%p1733_p7), %s237_s7, 6144  }
  0x42   : > { %1577 = vsyncadd (%p1733_p7), %s237_s7, 4294961152  ;;  %v332_v0 = vld [vmem:[%s1842_s10 + $0xf0] sm:$0xff]  ;;  %v330_v1 = vld [vmem:[%s1842_s10 + $0xe0] sm:$0xff]  ;;  %s1148_s23 = sshll.u32 %s238_s24, 7  ;;  %s2195_s11 = scalar_lea.vmem [#allocation9], %s1146_s30 }
  0x43   : > { %334 = vmatpush.msra.mxu0 %v332_v0  ;;  %1178 = vmatpush.msra.mxu3 %v332_v0  ;;  %v328_v2 = vld [vmem:[%s1842_s10 + $0xd0] sm:$0xff]  ;;  %v326_v3 = vld [vmem:[%s1842_s10 + $0xc0] sm:$0xff]  ;;  %v1853_v4 = vld [vmem:[%s1842_s10 + $0xf8] sm:$0xff]  ;;  %s1918_s29 = scalar_lea.vmem [#allocation8], %s1148_s23  ;;  %p1166_p7 = scmp.ne.s32.totalorder %s1608_s18, 0 }
  0x44   : > { %v324_v5 = vld [vmem:[%s1842_s10 + $0xb0] sm:$0xff]  ;;  %399 = vmatpush.msra.mxu1 %v1853_v4  ;;  %v1858_v6 = vld [vmem:[%s1842_s10 + $0xe8] sm:$0xff]  ;;  %v1861_v7 = vld [vmem:[%s1842_s10 + $0xd8] sm:$0xff] }
  0x45   : > { %335 = vmatpush.msra.mxu0 %v330_v1  ;;  %1179 = vmatpush.msra.mxu3 %v330_v1  ;;  %v322_v8 = vld [vmem:[%s1842_s10 + $0xa0] sm:$0xff]  ;;  %v1866_v9 = vld [vmem:[%s1842_s10 + $0xc8] sm:$0xff]  ;;  %v320_v10 = vld [vmem:[%s1842_s10 + $0x90] sm:$0xff] }
  0x46   : > { %400 = vmatpush.msra.mxu1 %v1858_v6  ;;  %v1871_v11 = vld [vmem:[%s1842_s10 + $0xb8] sm:$0xff]  ;;  %v318_v12 = vld [vmem:[%s1842_s10 + $0x80] sm:$0xff]  ;;  %v323_v13 = vld [vmem:[%s1842_s10 + $0xa8] sm:$0xff] }
  0x47   : > { %336 = vmatpush.msra.mxu0 %v328_v2  ;;  %1180 = vmatpush.msra.mxu3 %v328_v2  ;;  %v316_v14 = vld [vmem:[%s1842_s10 + $0x70] sm:$0xff]  ;;  %v321_v15 = vld [vmem:[%s1842_s10 + $0x98] sm:$0xff]  ;;  %v314_v16 = vld [vmem:[%s1842_s10 + $0x60] sm:$0xff] }
  0x48   : > { %401 = vmatpush.msra.mxu1 %v1861_v7  ;;  %v319_v17 = vld [vmem:[%s1842_s10 + $0x88] sm:$0xff]  ;;  %v312_v18 = vld [vmem:[%s1842_s10 + $0x50] sm:$0xff]  ;;  %v317_v19 = vld [vmem:[%s1842_s10 + $0x78] sm:$0xff] }
  0x49   : > { %337 = vmatpush.msra.mxu0 %v326_v3  ;;  %1181 = vmatpush.msra.mxu3 %v326_v3  ;;  %v310_v20 = vld [vmem:[%s1842_s10 + $0x40] sm:$0xff]  ;;  %v315_v21 = vld [vmem:[%s1842_s10 + $0x68] sm:$0xff]  ;;  %v308_v22 = vld [vmem:[%s1842_s10 + $0x30] sm:$0xff] }
  0x4a   : > { %402 = vmatpush.msra.mxu1 %v1866_v9  ;;  %v313_v23 = vld [vmem:[%s1842_s10 + $0x58] sm:$0xff]  ;;  %v306_v24 = vld [vmem:[%s1842_s10 + $0x20] sm:$0xff]  ;;  %v311_v25 = vld [vmem:[%s1842_s10 + $0x48] sm:$0xff] }
  0x4b   : > { %338 = vmatpush.msra.mxu0 %v324_v5  ;;  %1182 = vmatpush.msra.mxu3 %v324_v5  ;;  %v304_v26 = vld [vmem:[%s1842_s10 + $0x10] sm:$0xff]  ;;  %v309_v27 = vld [vmem:[%s1842_s10 + $0x38] sm:$0xff]  ;;  %v302_v28 = vld [vmem:[%s1842_s10] sm:$0xff] }
  0x4c   : > { %403 = vmatpush.msra.mxu1 %v1871_v11  ;;  %v286_v29 = vld [vmem:[%s1832_s21] sm:$0xff]  ;;  %v307_v30 = vld [vmem:[%s1842_s10 + $0x28] sm:$0xff]  ;;  %v305_v32 = vld [vmem:[%s1842_s10 + $0x18] sm:$0xff] }
  0x4d   : > { %339 = vmatpush.msra.mxu0 %v322_v8  ;;  %1183 = vmatpush.msra.mxu3 %v322_v8  ;;  %v298_v31 = vld [vmem:[%s1832_s21 + $0x60] sm:$0xff]  ;;  %v303_v33 = vld [vmem:[%s1842_s10 + $0x8] sm:$0xff]  ;;  %v288_v36 = vld [vmem:[%s1832_s21 + $0x10] sm:$0xff] }
  0x4e   : > { %404 = vmatpush.msra.mxu1 %v323_v13  ;;  %v287_v34 = vld [vmem:[%s1832_s21 + $0x8] sm:$0xff]  ;;  %v300_v37 = vld [vmem:[%s1832_s21 + $0x70] sm:$0xff]  ;;  %v289_v38 = vld [vmem:[%s1832_s21 + $0x18] sm:$0xff] }
  0x4f   : > { %340 = vmatpush.msra.mxu0 %v320_v10  ;;  %1184 = vmatpush.msra.mxu3 %v320_v10  ;;  %v299_v35 = vld [vmem:[%s1832_s21 + $0x68] sm:$0xff]  ;;  %v301_v39 = vld [vmem:[%s1832_s21 + $0x78] sm:$0xff]  ;;  %v290_v40 = vld [vmem:[%s1832_s21 + $0x20] sm:$0xff] }
  0x50   : > { %405 = vmatpush.msra.mxu1 %v321_v15  ;;  %v291_v41 = vld [vmem:[%s1832_s21 + $0x28] sm:$0xff]  ;;  %v292_v42 = vld [vmem:[%s1832_s21 + $0x30] sm:$0xff]  ;;  %v293_v43 = vld [vmem:[%s1832_s21 + $0x38] sm:$0xff] }
  0x51   : > { %341 = vmatpush.msra.mxu0 %v318_v12  ;;  %1185 = vmatpush.msra.mxu3 %v318_v12  ;;  %v294_v44 = vld [vmem:[%s1832_s21 + $0x40] sm:$0xff]  ;;  %v295_v45 = vld [vmem:[%s1832_s21 + $0x48] sm:$0xff]  ;;  %v296_v46 = vld [vmem:[%s1832_s21 + $0x50] sm:$0xff] }
  0x52   : > { %406 = vmatpush.msra.mxu1 %v319_v17  ;;  %v297_v47 = vld [vmem:[%s1832_s21 + $0x58] sm:$0xff]  ;;  %v814_v49 = vld [vmem:[%s1918_s29 + $0x70] sm:$0xff]  ;;  %v813_v50 = vld [vmem:[%s1918_s29 + $0x68] sm:$0xff] }
  0x53   : > { %342 = vmatpush.msra.mxu0 %v316_v14  ;;  %1186 = vmatpush.msra.mxu3 %v316_v14  ;;  %v815_v48 = vld [vmem:[%s1918_s29 + $0x78] sm:$0xff]  ;;  %v812_v51 = vld [vmem:[%s1918_s29 + $0x60] sm:$0xff]  ;;  %v810_v53 = vld [vmem:[%s1918_s29 + $0x50] sm:$0xff] }
  0x54   : > { %407 = vmatpush.msra.mxu1 %v317_v19  ;;  %816 = vmatpush.msra.mxu2 %v815_v48  ;;  %v811_v52 = vld [vmem:[%s1918_s29 + $0x58] sm:$0xff]  ;;  %v809_v54 = vld [vmem:[%s1918_s29 + $0x48] sm:$0xff]  ;;  %v808_v55 = vld [vmem:[%s1918_s29 + $0x40] sm:$0xff] }
  0x55   : > { %343 = vmatpush.msra.mxu0 %v314_v16  ;;  %1187 = vmatpush.msra.mxu3 %v314_v16  ;;  %v807_v56 = vld [vmem:[%s1918_s29 + $0x38] sm:$0xff]  ;;  %v806_v57 = vld [vmem:[%s1918_s29 + $0x30] sm:$0xff]  ;;  %v805_v58 = vld [vmem:[%s1918_s29 + $0x28] sm:$0xff] }
  0x56   : > { %408 = vmatpush.msra.mxu1 %v315_v21  ;;  %817 = vmatpush.msra.mxu2 %v814_v49  ;;  %v804_v59 = vld [vmem:[%s1918_s29 + $0x20] sm:$0xff]  ;;  %v803_v60 = vld [vmem:[%s1918_s29 + $0x18] sm:$0xff]  ;;  %v802_v61 = vld [vmem:[%s1918_s29 + $0x10] sm:$0xff] }
  0x57   : > { %344 = vmatpush.msra.mxu0 %v312_v18  ;;  %1188 = vmatpush.msra.mxu3 %v312_v18  ;;  %v801_v62 = vld [vmem:[%s1918_s29 + $0x8] sm:$0xff]  ;;  %v800_v0 = vld [vmem:[%s1918_s29] sm:$0xff] }
  0x58   : > { %409 = vmatpush.msra.mxu1 %v313_v23  ;;  %818 = vmatpush.msra.mxu2 %v813_v50 }
  0x59   : > { %345 = vmatpush.msra.mxu0 %v310_v20  ;;  %1189 = vmatpush.msra.mxu3 %v310_v20 }
  0x5a   : > { %410 = vmatpush.msra.mxu1 %v311_v25  ;;  %819 = vmatpush.msra.mxu2 %v812_v51 }
  0x5b   : > { %346 = vmatpush.msra.mxu0 %v308_v22  ;;  %1190 = vmatpush.msra.mxu3 %v308_v22 }
  0x5c   : > { %411 = vmatpush.msra.mxu1 %v309_v27  ;;  %820 = vmatpush.msra.mxu2 %v811_v52 }
  0x5d   : > { %347 = vmatpush.msra.mxu0 %v306_v24  ;;  %1191 = vmatpush.msra.mxu3 %v306_v24 }
  0x5e   : > { %412 = vmatpush.msra.mxu1 %v307_v30  ;;  %821 = vmatpush.msra.mxu2 %v810_v53 }
  0x5f   : > { %348 = vmatpush.msra.mxu0 %v304_v26  ;;  %1192 = vmatpush.msra.mxu3 %v304_v26 }
  0x60   : > { %413 = vmatpush.msra.mxu1 %v305_v32  ;;  %822 = vmatpush.msra.mxu2 %v809_v54 }
  0x61   : > { %349 = vmatpush.msra.mxu0 %v302_v28  ;;  %1193 = vmatpush.msra.mxu3 %v302_v28 }
  0x62   : > { %350 = vmatmul.f32.vlgmr.msra.gmra.mxu0 %v286_v29  ;;  %386 = vmatmul.f32.vlgmr.msra.gmra.mxu3 %v298_v31 }
  0x63   : > { %1194 = vmatpush.msrb.mxu3 %v1853_v4  ;;  %414 = vmatpush.msra.mxu1 %v303_v33 }
  0x64   : > { %415 = vmatmul.f32.vlgmr.msra.gmra.mxu1 %v286_v29  ;;  %823 = vmatpush.msra.mxu2 %v808_v55 }
  0x65   : > { %1195 = vmatpush.msrb.mxu3 %v1858_v6 }
  0x66   : > { %824 = vmatpush.msra.mxu2 %v807_v56 }
  0x67   : > { %1196 = vmatpush.msrb.mxu3 %v1861_v7 }
  0x68   : > { %825 = vmatpush.msra.mxu2 %v806_v57 }
  0x69   : > { %1197 = vmatpush.msrb.mxu3 %v1866_v9 }
  0x6a   : > { %353 = vmatmul.f32.gmra.mxu0 %v287_v34  ;;  %389 = vmatmul.f32.gmra.mxu3 %v299_v35 }
  0x6b   : > { %1198 = vmatpush.msrb.mxu3 %v1871_v11  ;;  %826 = vmatpush.msra.mxu2 %v805_v58 }
  0x6c   : > { %418 = vmatmul.f32.gmra.mxu1 %v287_v34 }
  0x6d   : > { %1199 = vmatpush.msrb.mxu3 %v323_v13  ;;  %827 = vmatpush.msra.mxu2 %v804_v59 }
  0x6f   : > { %1200 = vmatpush.msrb.mxu3 %v321_v15  ;;  %828 = vmatpush.msra.mxu2 %v803_v60 }
  0x71   : > { %1201 = vmatpush.msrb.mxu3 %v319_v17  ;;  %829 = vmatpush.msra.mxu2 %v802_v61 }
  0x72   : > { %356 = vmatmul.f32.gmra.mxu0 %v288_v36  ;;  %392 = vmatmul.f32.gmra.mxu3 %v300_v37 }
  0x73   : > { %1202 = vmatpush.msrb.mxu3 %v317_v19  ;;  %830 = vmatpush.msra.mxu2 %v801_v62 }
  0x74   : > { %421 = vmatmul.f32.gmra.mxu1 %v288_v36 }
  0x75   : > { %1203 = vmatpush.msrb.mxu3 %v315_v21  ;;  %831 = vmatpush.msra.mxu2 %v800_v0 }
  0x77   : > { %1204 = vmatpush.msrb.mxu3 %v313_v23 }
  0x79   : > { %1205 = vmatpush.msrb.mxu3 %v311_v25 }
  0x7a   : > { %359 = vmatmul.f32.gmra.mxu0 %v289_v38  ;;  %395 = vmatmul.f32.gmra.mxu3 %v301_v39 }
  0x7b   : > { %1206 = vmatpush.msrb.mxu3 %v309_v27 }
  0x7c   : > { %424 = vmatmul.f32.gmra.mxu1 %v289_v38 }
  0x7d   : > { %1207 = vmatpush.msrb.mxu3 %v307_v30 }
  0x7f   : > { %1208 = vmatpush.msrb.mxu3 %v305_v32 }
  0x81   : > { %1209 = vmatpush.msrb.mxu3 %v303_v33 }
  0x82   : > { %362 = vmatmul.f32.gmra.mxu0 %v290_v40  ;;  %451 = vmatmul.f32.vlgmr.msrb.gmra.mxu3 %v298_v31 }
  0x83   : > { %1210 = vmatpush.msra.mxu3 %v815_v48 }
  0x84   : > { %427 = vmatmul.f32.gmra.mxu1 %v290_v40 }
  0x85   : > { %1211 = vmatpush.msra.mxu3 %v814_v49 }
  0x87   : > { %1212 = vmatpush.msra.mxu3 %v813_v50 }
  0x89   : > { %1213 = vmatpush.msra.mxu3 %v812_v51 }
  0x8a   : > { %365 = vmatmul.f32.gmra.mxu0 %v291_v41  ;;  %454 = vmatmul.f32.gmra.mxu3 %v299_v35 }
  0x8b   : > { %1214 = vmatpush.msra.mxu3 %v811_v52 }
  0x8c   : > { %430 = vmatmul.f32.gmra.mxu1 %v291_v41 }
  0x8d   : > { %1215 = vmatpush.msra.mxu3 %v810_v53 }
  0x8f   : > { %1216 = vmatpush.msra.mxu3 %v809_v54 }
  0x91   : > { %1217 = vmatpush.msra.mxu3 %v808_v55 }
  0x92   : > { %368 = vmatmul.f32.gmra.mxu0 %v292_v42  ;;  %457 = vmatmul.f32.gmra.mxu3 %v300_v37 }
  0x93   : > { %1218 = vmatpush.msra.mxu3 %v807_v56 }
  0x94   : > { %433 = vmatmul.f32.gmra.mxu1 %v292_v42 }
  0x95   : > { %1219 = vmatpush.msra.mxu3 %v806_v57 }
  0x97   : > { %1220 = vmatpush.msra.mxu3 %v805_v58 }
  0x99   : > { %1221 = vmatpush.msra.mxu3 %v804_v59 }
  0x9a   : > { %371 = vmatmul.f32.gmra.mxu0 %v293_v43  ;;  %460 = vmatmul.f32.gmra.mxu3 %v301_v39 }
  0x9b   : > { %1222 = vmatpush.msra.mxu3 %v803_v60 }
  0x9c   : > { %436 = vmatmul.f32.gmra.mxu1 %v293_v43 }
  0x9d   : > { %1223 = vmatpush.msra.mxu3 %v802_v61 }
  0x9f   : > { %1224 = vmatpush.msra.mxu3 %v801_v62 }
  0xa1   : > { %1225 = vmatpush.msra.mxu3 %v800_v0 }
  0xa2   : > { %374 = vmatmul.f32.gmra.mxu0 %v294_v44 }
  0xa4   : > { %439 = vmatmul.f32.gmra.mxu1 %v294_v44 }
  0xaa   : > { %377 = vmatmul.f32.gmra.mxu0 %v295_v45 }
  0xac   : > { %442 = vmatmul.f32.gmra.mxu1 %v295_v45 }
  0xb2   : > { %380 = vmatmul.f32.gmra.mxu0 %v296_v46 }
  0xb4   : > { %445 = vmatmul.f32.gmra.mxu1 %v296_v46 }
  0xba   : > { %383 = vmatmul.f32.gmra.mxu0 %v297_v47 }
  0xbc   : > { %448 = vmatmul.f32.gmra.mxu1 %v297_v47 }
  0xdf   : > { %v351_v63 = vpop.f32.mrf.mxu0 }
  0xe0   : > { %v1150_v1 = vmul.f32 -1.442695, %v351_v63 }
  0xe1   : > { %v416_v2 = vpop.f32.mrf.mxu1 }
  0xe2   : > { %1344 = vpow2.f32 %v1150_v1 }
  0xe5   : > { %v1936_v3 = vpop.f32.mrf.mxu3 }
  0xe6   : > { %v1162_v5 = vmul.f32 -1.442695, %v1936_v3 }
  0xe7   : > { %v1938_v4 = vpop.f32.mrf.mxu0 }
  0xe8   : > { %v1345_v6 = vpop.eup %1344  ;;  %v1151_v7 = vmul.f32 -1.442695, %v1938_v4  ;;  %1346 = vpow2.f32 %v1162_v5 }
  0xe9   : > { %v512_v8 = vadd.f32 1.0, %v1345_v6  ;;  %v1946_v12 = vpop.f32.mrf.mxu1 }
  0xea   : > { %1348 = vpow2.f32 %v1151_v7 }
  0xeb   : > { %1350 = vrcp.f32 %v512_v8  ;;  %v539_v21 = vand.u32 2147483648, %v512_v8  ;;  %v537_v23 = vand.u32 2147483647, %v512_v8  ;;  %vm533_vm1 = vweird.f32 %v512_v8 }
  0xed   : > { %v1942_v9 = vpop.f32.mrf.mxu3  ;;  %v540_v32 = vor.u32 1.1754944e-38, %v539_v21  ;;  %vm538_vm3 = vcmp.eq.f32.partialorder %v537_v23, 8.507059e+37 }
  0xee   : > { %v1347_v10 = vpop.eup %1346  ;;  %v1163_v13 = vmul.f32 -1.442695, %v1942_v9 }
  0xef   : > { %v1944_v11 = vpop.f32.mrf.mxu0  ;;  %v1950_v16 = vadd.f32 1.0, %v1347_v10 }
  0xf0   : > { %v1349_v14 = vpop.eup %1348  ;;  %v1152_v15 = vmul.f32 -1.442695, %v1944_v11  ;;  %1352 = vpow2.f32 %v1163_v13 }
  0xf1   : > { %v1351_v17 = vpop.eup %1350  ;;  %v1952_v18 = vadd.f32 1.0, %v1349_v14  ;;  %v1965_v35 = vpop.f32.mrf.mxu1  ;;  %vm713_vm6 = vweird.f32 %v1950_v16  ;;  %v719_v56 = vand.u32 2147483648, %v1950_v16  ;;  %v717_v60 = vand.u32 2147483647, %v1950_v16 }
  0xf2   : > { %v529_v19 = vmul.f32 %v1351_v17, %v512_v8  ;;  %1354 = vpow2.f32 %v1152_v15  ;;  %vm534_vm0 = vweird.f32 %v1351_v17 }
  0xf3   : > { %1356 = vrcp.f32 %v1952_v18  ;;  %vm535_vm2 = vmor %vm533_vm1, %vm534_vm0  ;;  %v554_v33 = vand.u32 2147483648, %v1952_v18  ;;  %vm548_vm4 = vweird.f32 %v1952_v18  ;;  %v552_v44 = vand.u32 2147483647, %v1952_v18 }
  0xf4   : > { %v530_v20 = vsub.f32 1.0, %v529_v19  ;;  %1358 = vrcp.f32 %v1950_v16  ;;  %v720_v10 = vor.u32 1.1754944e-38, %v719_v56  ;;  %vm718_vm13 = vcmp.eq.f32.partialorder %v717_v60, 8.507059e+37 }
  0xf5   : > { %v1956_v24 = vpop.f32.mrf.mxu3  ;;  %v555_v45 = vor.u32 1.1754944e-38, %v554_v33  ;;  %vm553_vm9 = vcmp.eq.f32.partialorder %v552_v44, 8.507059e+37 }
  0xf6   : > { %v531_v22 = vmul.f32 %v1351_v17, %v530_v20  ;;  %v1353_v25 = vpop.eup %1352  ;;  %v1164_v30 = vmul.f32 -1.442695, %v1956_v24 }
  0xf7   : > { %v1958_v26 = vpop.f32.mrf.mxu0  ;;  %v1971_v40 = vadd.f32 1.0, %v1353_v25 }
  0xf8   : > { %v1355_v27 = vpop.eup %1354  ;;  %v532_v28 = vadd.f32 %v1351_v17, %v531_v22  ;;  %v1153_v29 = vmul.f32 -1.442695, %v1958_v26 }
  0xf9   : > { %v1357_v31 = vpop.eup %1356  ;;  %v1963_v34 = vadd.f32 1.0, %v1355_v27  ;;  %v2006_v5 = vpop.f32.mrf.mxu1  ;;  %vm728_vm15 = vweird.f32 %v1971_v40  ;;  %v734_v33 = vand.u32 2147483648, %v1971_v40 }
  0xfa   : > { %v1967_v36 = vpop.eup %1358  ;;  %v536_v37 = vsel %vm535_vm2, %v1351_v17, %v532_v28  ;;  %v544_v38 = vmul.f32 %v1357_v31, %v1952_v18  ;;  %1360 = vpow2.f32 %v1153_v29  ;;  %vm549_vm5 = vweird.f32 %v1357_v31 }
  0xfb   : > { %v541_v39 = vsel %vm538_vm3, %v540_v32, %v536_v37  ;;  %1362 = vrcp.f32 %v1963_v34  ;;  %v709_v43 = vmul.f32 %v1967_v36, %v1950_v16  ;;  %vm714_vm7 = vweird.f32 %v1967_v36  ;;  %vm550_vm8 = vmor %vm548_vm4, %vm549_vm5 }
  0xfc   : > { %v768_v41 = vmul.f32 %v541_v39, %v351_v63  ;;  %v545_v42 = vsub.f32 1.0, %v544_v38  ;;  %1364 = vpow2.f32 %v1164_v30  ;;  %v567_v58 = vand.u32 2147483647, %v1963_v34  ;;  %vm2002_vm10 = vmor %vm713_vm6, %vm714_vm7 }
  0xfd   : > { %v710_v48 = vsub.f32 1.0, %v709_v43  ;;  %v1977_v49 = vpop.f32.mrf.mxu3  ;;  %1366 = vrcp.f32 %v1971_v40  ;;  %v569_v1 = vand.u32 2147483648, %v1963_v34  ;;  %vm563_vm11 = vweird.f32 %v1963_v34 }
  0xfe   : > { %v546_v46 = vmul.f32 %v1357_v31, %v545_v42  ;;  %v784_v47 = vmul.f32 %v768_v41, %v416_v2  ;;  %v1165_v51 = vmul.f32 -1.442695, %v1977_v49  ;;  %vm2013_vm12 = vcmp.eq.f32.partialorder %v567_v58, 8.507059e+37 }
  0xff   : > { %v1979_v50 = vpop.f32.mrf.mxu0  ;;  %v711_v55 = vmul.f32 %v1967_v36, %v710_v48  ;;  %v570_v20 = vor.u32 1.1754944e-38, %v569_v1  ;;  %v732_v30 = vand.u32 2147483647, %v1971_v40 }
 0x100   : > { %v1361_v52 = vpop.eup %1360  ;;  %v547_v53 = vadd.f32 %v1357_v31, %v546_v46  ;;  %v1154_v54 = vmul.f32 -1.442695, %v1979_v50  ;;  %832 = vmatmul.f32.vlgmr.msra.gmra.mxu2 %v784_v47  ;;  %1368 = vpow2.f32 %v1165_v51 }
 0x101   : > { %v1363_v57 = vpop.eup %1362  ;;  %v1992_v59 = vadd.f32 1.0, %v1361_v52  ;;  %v712_v8 = vadd.f32 %v1967_v36, %v711_v55  ;;  %vm2055_vm4 = vcmp.eq.f32.partialorder %v732_v30, 8.507059e+37  ;;  %v2059_v47 = vpop.f32.mrf.mxu1 }
 0x102   : > { %v1365_v61 = vpop.eup %1364  ;;  %v551_v62 = vsel %vm550_vm8, %v1357_v31, %v547_v53  ;;  %v559_v63 = vmul.f32 %v1363_v57, %v1963_v34  ;;  %1370 = vpow2.f32 %v1154_v54  ;;  %vm564_vm14 = vweird.f32 %v1363_v57 }
 0x103   : > { %v556_v0 = vsel %vm553_vm9, %v555_v45, %v551_v62  ;;  %1372 = vrcp.f32 %v1992_v59  ;;  %v2010_v13 = vpop.eup %1366  ;;  %v2017_v15 = vadd.f32 1.0, %v1365_v61  ;;  %v582_v21 = vand.u32 2147483647, %v1992_v59  ;;  %vm565_vm0 = vmor %vm563_vm11, %vm564_vm14 }
 0x104   : > { %v769_v6 = vmul.f32 %v556_v0, %v1938_v4  ;;  %v560_v7 = vsub.f32 1.0, %v559_v63  ;;  %v716_v4 = vsel %vm2002_vm10, %v1967_v36, %v712_v8  ;;  %v724_v23 = vmul.f32 %v2010_v13, %v1971_v40 }
 0x105   : > { %v452_v18 = vpop.f32.mrf.mxu3  ;;  %v721_v28 = vsel %vm718_vm13, %v720_v10, %v716_v4  ;;  %1374 = vrcp.f32 %v2017_v15  ;;  %vm729_vm1 = vweird.f32 %v2010_v13  ;;  %v584_v43 = vand.u32 2147483648, %v1992_v59 }
 0x106   : > { %v561_v16 = vmul.f32 %v1363_v57, %v560_v7  ;;  %v785_v17 = vmul.f32 %v769_v6, %v1946_v12  ;;  %v1369_v19 = vpop.eup %1368  ;;  %v725_v32 = vsub.f32 1.0, %v724_v23  ;;  %v780_v34 = vmul.f32 %v721_v28, %v1936_v3  ;;  %vm2051_vm3 = vmor %vm728_vm15, %vm729_vm1 }
 0x107   : > { %v2024_v22 = vpop.f32.mrf.mxu0  ;;  %v2044_v39 = vadd.f32 1.0, %v1369_v19  ;;  %v735_v3 = vor.u32 1.1754944e-38, %v734_v33  ;;  %vm578_vm5 = vweird.f32 %v1992_v59  ;;  %vm2067_vm6 = vcmp.eq.f32.partialorder %v582_v21, 8.507059e+37 }
 0x108   : > { %v1371_v25 = vpop.eup %1370  ;;  %v562_v27 = vadd.f32 %v1363_v57, %v561_v16  ;;  %v1155_v29 = vmul.f32 -1.442695, %v2024_v22  ;;  %835 = vmatmul.f32.gmra.mxu2 %v785_v17  ;;  %v726_v44 = vmul.f32 %v2010_v13, %v725_v32  ;;  %v796_v55 = vmul.f32 %v780_v34, %v452_v18 }
 0x109   : > { %v1373_v12 = vpop.eup %1372  ;;  %v2034_v31 = vadd.f32 1.0, %v1371_v25  ;;  %v585_v60 = vor.u32 1.1754944e-38, %v584_v43  ;;  %v747_v10 = vand.u32 2147483647, %v2017_v15  ;;  %vm743_vm10 = vweird.f32 %v2017_v15 }
 0x10a   : > { %v566_v36 = vsel %vm565_vm0, %v1363_v57, %v562_v27  ;;  %v574_v37 = vmul.f32 %v1373_v12, %v1992_v59  ;;  %1376 = vpow2.f32 %v1155_v29  ;;  %vm579_vm2 = vweird.f32 %v1373_v12  ;;  %868 = vmatmul.f32.vlgmr.msra.gmra.mxu3 %v796_v55 }
 0x10b   : > { %v571_v38 = vsel %vm2013_vm12, %v570_v20, %v566_v36  ;;  %1378 = vrcp.f32 %v2034_v31  ;;  %v597_v48 = vand.u32 2147483647, %v2034_v31  ;;  %v727_v51 = vadd.f32 %v2010_v13, %v726_v44  ;;  %v2064_v53 = vpop.eup %1374  ;;  %vm580_vm7 = vmor %vm578_vm5, %vm579_vm2 }
 0x10c   : > { %v770_v41 = vmul.f32 %v571_v38, %v1944_v11  ;;  %v575_v42 = vsub.f32 1.0, %v574_v37  ;;  %1380 = vrcp.f32 %v2044_v39  ;;  %v599_v62 = vand.u32 2147483648, %v2034_v31 }
 0x10d   : > { %v455_v56 = vpop.f32.mrf.mxu3  ;;  %v739_v1 = vmul.f32 %v2064_v53, %v2017_v15  ;;  %vm593_vm8 = vweird.f32 %v2034_v31  ;;  %vm2088_vm9 = vcmp.eq.f32.partialorder %v597_v48, 8.507059e+37  ;;  %vm744_vm11 = vweird.f32 %v2064_v53 }
 0x10e   : > { %v576_v11 = vmul.f32 %v1373_v12, %v575_v42  ;;  %v786_v52 = vmul.f32 %v770_v41, %v1965_v35  ;;  %v731_v35 = vsel %vm2051_vm3, %v2010_v13, %v727_v51  ;;  %v749_v13 = vand.u32 2147483648, %v2017_v15  ;;  %v431_v15 = vpop.f32.mrf.mxu1  ;;  %vm2114_vm14 = vmor %vm743_vm10, %vm744_vm11 }
 0x10f   : > { %v2071_v54 = vpop.f32.mrf.mxu0  ;;  %v736_v0 = vsel %vm2055_vm4, %v735_v3, %v731_v35  ;;  %v600_v18 = vor.u32 1.1754944e-38, %v599_v62  ;;  %v740_v19 = vsub.f32 1.0, %v739_v1  ;;  %vm2108_vm13 = vcmp.eq.f32.partialorder %v747_v10, 8.507059e+37 }
 0x110   : > { %v1377_v57 = vpop.eup %1376  ;;  %v577_v58 = vadd.f32 %v1373_v12, %v576_v11  ;;  %v1156_v61 = vmul.f32 -1.442695, %v2071_v54  ;;  %838 = vmatmul.f32.gmra.mxu2 %v786_v52  ;;  %v781_v4 = vmul.f32 %v736_v0, %v1942_v9  ;;  %v750_v27 = vor.u32 1.1754944e-38, %v749_v13 }
 0x111   : > { %v1379_v59 = vpop.eup %1378  ;;  %v2080_v63 = vadd.f32 1.0, %v1377_v57  ;;  %v741_v9 = vmul.f32 %v2064_v53, %v740_v19  ;;  %vm758_vm0 = vweird.f32 %v2044_v39  ;;  %v762_v37 = vand.u32 2147483647, %v2044_v39 }
 0x112   : > { %v581_v2 = vsel %vm580_vm7, %v1373_v12, %v577_v58  ;;  %v589_v6 = vmul.f32 %v1379_v59, %v2034_v31  ;;  %v2099_v17 = vpop.eup %1380  ;;  %vm594_vm12 = vweird.f32 %v1379_v59  ;;  %v797_v32 = vmul.f32 %v781_v4, %v455_v56 }
 0x113   : > { %v586_v8 = vsel %vm2067_vm6, %v585_v60, %v581_v2  ;;  %1382 = vrcp.f32 %v2080_v63  ;;  %v754_v23 = vmul.f32 %v2099_v17, %v2044_v39  ;;  %vm595_vm15 = vmor %vm593_vm8, %vm594_vm12  ;;  %v742_v36 = vadd.f32 %v2064_v53, %v741_v9 }
 0x114   : > { %v771_v14 = vmul.f32 %v586_v8, %v1958_v26  ;;  %v590_v16 = vsub.f32 1.0, %v589_v6  ;;  %1384 = vpow2.f32 %v1156_v61  ;;  %v612_v26 = vand.u32 2147483647, %v2080_v63  ;;  %871 = vmatmul.f32.gmra.mxu3 %v797_v32 }
 0x115   : > { %v755_v12 = vsub.f32 1.0, %v754_v23  ;;  %v764_v38 = vand.u32 2147483648, %v2044_v39  ;;  %v458_v34 = vpop.f32.mrf.mxu3  ;;  %vm759_vm1 = vweird.f32 %v2099_v17  ;;  %v746_v45 = vsel %vm2114_vm14, %v2064_v53, %v742_v36 }
 0x116   : > { %v591_v20 = vmul.f32 %v1379_v59, %v590_v16  ;;  %v787_v21 = vmul.f32 %v771_v14, %v2006_v5  ;;  %v614_v48 = vand.u32 2147483648, %v2080_v63  ;;  %v751_v51 = vsel %vm2108_vm13, %v750_v27, %v746_v45  ;;  %vm2143_vm3 = vmor %vm758_vm0, %vm759_vm1 }
 0x117   : > { %v2112_v28 = vpop.f32.mrf.mxu0  ;;  %v756_v46 = vmul.f32 %v2099_v17, %v755_v12  ;;  %vm2147_vm4 = vcmp.eq.f32.partialorder %v762_v37, 8.507059e+37  ;;  %v782_v55 = vmul.f32 %v751_v51, %v1956_v24  ;;  %vm608_vm5 = vweird.f32 %v2080_v63 }
 0x118   : > { %v592_v29 = vadd.f32 %v1379_v59, %v591_v20  ;;  %v1157_v5 = vmul.f32 -1.442695, %v2112_v28  ;;  %841 = vmatmul.f32.gmra.mxu2 %v787_v21  ;;  %v615_v24 = vor.u32 1.1754944e-38, %v614_v48  ;;  %vm613_vm7 = vcmp.eq.f32.partialorder %v612_v26, 8.507059e+37 }
 0x119   : > { %v1383_v33 = vpop.eup %1382  ;;  %v757_v56 = vadd.f32 %v2099_v17, %v756_v46 }
 0x11a   : > { %v1385_v41 = vpop.eup %1384  ;;  %v596_v42 = vsel %vm595_vm15, %v1379_v59, %v592_v29  ;;  %v604_v43 = vmul.f32 %v1383_v33, %v2080_v63  ;;  %1386 = vpow2.f32 %v1157_v5  ;;  %vm609_vm2 = vweird.f32 %v1383_v33  ;;  %v434_v63 = vpop.f32.mrf.mxu1 }
 0x11b   : > { %v601_v31 = vsel %vm2088_vm9, %v600_v18, %v596_v42  ;;  %v2130_v44 = vadd.f32 1.0, %v1385_v41  ;;  %v761_v35 = vsel %vm2143_vm3, %v2099_v17, %v757_v56  ;;  %v798_v59 = vmul.f32 %v782_v55, %v458_v34  ;;  %vm610_vm6 = vmor %vm608_vm5, %vm609_vm2 }
 0x11c   : > { %v772_v3 = vmul.f32 %v601_v31, %v1979_v50  ;;  %v605_v11 = vsub.f32 1.0, %v604_v43  ;;  %v765_v50 = vor.u32 1.1754944e-38, %v764_v38 }
 0x11d   : > { %1388 = vrcp.f32 %v2130_v44  ;;  %874 = vmatmul.f32.gmra.mxu3 %v798_v59  ;;  %v461_v7 = vpop.f32.mrf.mxu3  ;;  %v629_v4 = vand.u32 2147483648, %v2130_v44  ;;  %vm623_vm9 = vweird.f32 %v2130_v44 }
 0x11e   : > { %v606_v40 = vmul.f32 %v1383_v33, %v605_v11  ;;  %v788_v57 = vmul.f32 %v772_v3, %v2059_v47  ;;  %v766_v47 = vsel %vm2147_vm4, %v765_v50, %v761_v35 }
 0x11f   : > { %v2155_v58 = vpop.f32.mrf.mxu0  ;;  %v783_v1 = vmul.f32 %v766_v47, %v1977_v49  ;;  %v627_v49 = vand.u32 2147483647, %v2130_v44  ;;  %v630_v9 = vor.u32 1.1754944e-38, %v629_v4 }
 0x120   : > { %v1387_v39 = vpop.eup %1386  ;;  %v607_v60 = vadd.f32 %v1383_v33, %v606_v40  ;;  %v1158_v61 = vmul.f32 -1.442695, %v2155_v58  ;;  %844 = vmatmul.f32.gmra.mxu2 %v788_v57 }
 0x121   : > { %v519_v62 = vadd.f32 1.0, %v1387_v39  ;;  %v799_v16 = vmul.f32 %v783_v1, %v461_v7  ;;  %vm628_vm11 = vcmp.eq.f32.partialorder %v627_v49, 8.507059e+37 }
 0x122   : > { %v611_v0 = vsel %vm610_vm6, %v1383_v33, %v607_v60  ;;  %1390 = vpow2.f32 %v1158_v61  ;;  %v437_v25 = vpop.f32.mrf.mxu1 }
 0x123   : > { %v1389_v2 = vpop.eup %1388  ;;  %v616_v6 = vsel %vm613_vm7, %v615_v24, %v611_v0  ;;  %1392 = vrcp.f32 %v519_v62  ;;  %v644_v30 = vand.u32 2147483648, %v519_v62  ;;  %v642_v32 = vand.u32 2147483647, %v519_v62 }
 0x124   : > { %v773_v8 = vmul.f32 %v616_v6, %v2024_v22  ;;  %v619_v10 = vmul.f32 %v1389_v2, %v2130_v44  ;;  %vm624_vm8 = vweird.f32 %v1389_v2  ;;  %vm638_vm13 = vweird.f32 %v519_v62 }
 0x125   : > { %877 = vmatmul.f32.gmra.mxu3 %v799_v16  ;;  %vm625_vm10 = vmor %vm623_vm9, %vm624_vm8  ;;  %v645_v42 = vor.u32 1.1754944e-38, %v644_v30  ;;  %vm643_vm15 = vcmp.eq.f32.partialorder %v642_v32, 8.507059e+37 }
 0x126   : > { %v620_v13 = vsub.f32 1.0, %v619_v10  ;;  %v789_v14 = vmul.f32 %v773_v8, %v431_v15 }
 0x127   : > { %v2168_v17 = vpop.f32.mrf.mxu0 }
 0x128   : > { %v1391_v18 = vpop.eup %1390  ;;  %v621_v19 = vmul.f32 %v1389_v2, %v620_v13  ;;  %v1159_v20 = vmul.f32 -1.442695, %v2168_v17  ;;  %847 = vmatmul.f32.gmra.mxu2 %v789_v14 }
 0x129   : > { %v1393_v21 = vpop.eup %1392  ;;  %v520_v23 = vadd.f32 1.0, %v1391_v18 }
 0x12a   : > { %v622_v22 = vadd.f32 %v1389_v2, %v621_v19  ;;  %v634_v26 = vmul.f32 %v1393_v21, %v519_v62  ;;  %1394 = vpow2.f32 %v1159_v20  ;;  %vm639_vm12 = vweird.f32 %v1393_v21  ;;  %v440_v11 = vpop.f32.mrf.mxu1 }
 0x12b   : > { %1396 = vrcp.f32 %v520_v23  ;;  %vm640_vm14 = vmor %vm638_vm13, %vm639_vm12  ;;  %v659_v3 = vand.u32 2147483648, %v520_v23  ;;  %v657_v51 = vand.u32 2147483647, %v520_v23  ;;  %vm653_vm1 = vweird.f32 %v520_v23 }
 0x12c   : > { %v626_v27 = vsel %vm625_vm10, %v1389_v2, %v622_v22  ;;  %v635_v15 = vsub.f32 1.0, %v634_v26 }
 0x12d   : > { %v631_v29 = vsel %vm628_vm11, %v630_v9, %v626_v27  ;;  %v660_v57 = vor.u32 1.1754944e-38, %v659_v3  ;;  %vm658_vm3 = vcmp.eq.f32.partialorder %v657_v51, 8.507059e+37 }
 0x12e   : > { %v774_v5 = vmul.f32 %v631_v29, %v2071_v54  ;;  %v636_v12 = vmul.f32 %v1393_v21, %v635_v15 }
 0x12f   : > { %v2174_v33 = vpop.f32.mrf.mxu0 }
 0x130   : > { %v1395_v36 = vpop.eup %1394  ;;  %v637_v37 = vadd.f32 %v1393_v21, %v636_v12  ;;  %v790_v38 = vmul.f32 %v774_v5, %v434_v63  ;;  %v1160_v34 = vmul.f32 -1.442695, %v2174_v33 }
 0x131   : > { %v1397_v41 = vpop.eup %1396  ;;  %v521_v43 = vadd.f32 1.0, %v1395_v36 }
 0x132   : > { %v641_v31 = vsel %vm640_vm14, %v1393_v21, %v637_v37  ;;  %v649_v44 = vmul.f32 %v1397_v41, %v520_v23  ;;  %1398 = vpow2.f32 %v1160_v34  ;;  %850 = vmatmul.f32.gmra.mxu2 %v790_v38  ;;  %vm654_vm0 = vweird.f32 %v1397_v41  ;;  %v443_v0 = vpop.f32.mrf.mxu1 }
 0x133   : > { %v646_v54 = vsel %vm643_vm15, %v645_v42, %v641_v31  ;;  %1400 = vrcp.f32 %v521_v43  ;;  %vm655_vm2 = vmor %vm653_vm1, %vm654_vm0  ;;  %v674_v24 = vand.u32 2147483648, %v521_v43  ;;  %v672_v47 = vand.u32 2147483647, %v521_v43 }
 0x134   : > { %v775_v45 = vmul.f32 %v646_v54, %v2112_v28  ;;  %v650_v46 = vsub.f32 1.0, %v649_v44  ;;  %vm668_vm5 = vweird.f32 %v521_v43 }
 0x135   : > { %v675_v7 = vor.u32 1.1754944e-38, %v674_v24  ;;  %vm673_vm7 = vcmp.eq.f32.partialorder %v672_v47, 8.507059e+37 }
 0x136   : > { %v651_v48 = vmul.f32 %v1397_v41, %v650_v46  ;;  %v791_v52 = vmul.f32 %v775_v45, %v437_v25 }
 0x137   : > { %v2178_v53 = vpop.f32.mrf.mxu0 }
 0x138   : > { %v1399_v50 = vpop.eup %1398  ;;  %v652_v40 = vadd.f32 %v1397_v41, %v651_v48  ;;  %v1161_v55 = vmul.f32 -1.442695, %v2178_v53 }
 0x139   : > { %v1401_v56 = vpop.eup %1400  ;;  %v522_v39 = vadd.f32 1.0, %v1399_v50 }
 0x13a   : > { %v656_v60 = vsel %vm655_vm2, %v1397_v41, %v652_v40  ;;  %v664_v28 = vmul.f32 %v1401_v56, %v521_v43  ;;  %1402 = vpow2.f32 %v1161_v55  ;;  %853 = vmatmul.f32.gmra.mxu2 %v791_v52  ;;  %vm669_vm4 = vweird.f32 %v1401_v56  ;;  %v446_v22 = vpop.f32.mrf.mxu1 }
 0x13b   : > { %v661_v35 = vsel %vm658_vm3, %v660_v57, %v656_v60  ;;  %1404 = vrcp.f32 %v522_v39  ;;  %vm670_vm6 = vmor %vm668_vm5, %vm669_vm4  ;;  %v689_v4 = vand.u32 2147483648, %v522_v39  ;;  %v687_v19 = vand.u32 2147483647, %v522_v39 }
 0x13c   : > { %v776_v61 = vmul.f32 %v661_v35, %v2155_v58  ;;  %v665_v59 = vsub.f32 1.0, %v664_v28  ;;  %vm683_vm9 = vweird.f32 %v522_v39 }
 0x13d   : > { %v690_v23 = vor.u32 1.1754944e-38, %v689_v4  ;;  %vm688_vm11 = vcmp.eq.f32.partialorder %v687_v19, 8.507059e+37 }
 0x13e   : > { %v666_v62 = vmul.f32 %v1401_v56, %v665_v59  ;;  %v792_v63 = vmul.f32 %v776_v61, %v440_v11 }
 0x140   : > { %v1403_v1 = vpop.eup %1402  ;;  %v667_v2 = vadd.f32 %v1401_v56, %v666_v62 }
 0x141   : > { %v1405_v6 = vpop.eup %1404  ;;  %v523_v8 = vadd.f32 1.0, %v1403_v1 }
 0x142   : > { %v671_v10 = vsel %vm670_vm6, %v1401_v56, %v667_v2  ;;  %v679_v13 = vmul.f32 %v1405_v6, %v522_v39  ;;  %856 = vmatmul.f32.gmra.mxu2 %v792_v63  ;;  %vm684_vm8 = vweird.f32 %v1405_v6  ;;  %v449_v38 = vpop.f32.mrf.mxu1 }
 0x143   : > { %v676_v14 = vsel %vm673_vm7, %v675_v7, %v671_v10  ;;  %1406 = vrcp.f32 %v523_v8  ;;  %vm685_vm10 = vmor %vm683_vm9, %vm684_vm8  ;;  %v704_v15 = vand.u32 2147483648, %v523_v8  ;;  %v702_v30 = vand.u32 2147483647, %v523_v8 }
 0x144   : > { %v777_v58 = vmul.f32 %v676_v14, %v2168_v17  ;;  %v680_v16 = vsub.f32 1.0, %v679_v13  ;;  %vm698_vm13 = vweird.f32 %v523_v8 }
 0x145   : > { %v705_v32 = vor.u32 1.1754944e-38, %v704_v15  ;;  %vm703_vm15 = vcmp.eq.f32.partialorder %v702_v30, 8.507059e+37 }
 0x146   : > { %v681_v18 = vmul.f32 %v1405_v6, %v680_v16  ;;  %v793_v49 = vmul.f32 %v777_v58, %v443_v0 }
 0x148   : > { %v682_v20 = vadd.f32 %v1405_v6, %v681_v18 }
 0x149   : > { %v1407_v21 = vpop.eup %1406 }
 0x14a   : > { %v686_v26 = vsel %vm685_vm10, %v1405_v6, %v682_v20  ;;  %v694_v9 = vmul.f32 %v1407_v21, %v523_v8  ;;  %859 = vmatmul.f32.gmra.mxu2 %v793_v49  ;;  %vm699_vm12 = vweird.f32 %v1407_v21 }
 0x14b   : > { %v691_v25 = vsel %vm688_vm11, %v690_v23, %v686_v26  ;;  %vm700_vm14 = vmor %vm698_vm13, %vm699_vm12 }
 0x14c   : > { %v778_v27 = vmul.f32 %v691_v25, %v2174_v33  ;;  %v695_v17 = vsub.f32 1.0, %v694_v9 }
 0x14e   : > { %v696_v29 = vmul.f32 %v1407_v21, %v695_v17  ;;  %v794_v5 = vmul.f32 %v778_v27, %v446_v22 }
 0x150   : > { %v697_v12 = vadd.f32 %v1407_v21, %v696_v29 }
 0x152   : > { %v701_v36 = vsel %vm700_vm14, %v1407_v21, %v697_v12  ;;  %862 = vmatmul.f32.gmra.mxu2 %v794_v5 }
 0x153   : > { %v706_v37 = vsel %vm703_vm15, %v705_v32, %v701_v36 }
 0x154   : > { %v779_v34 = vmul.f32 %v706_v37, %v2178_v53 }
 0x156   : > { %v795_v41 = vmul.f32 %v779_v34, %v449_v38 }
 0x15a   : > { %865 = vmatmul.f32.gmra.mxu2 %v795_v41 }
 0x183   : > { %v833_v33 = vpop.f32.mrf.mxu2 }
 0x18b   : > { %v836_v42 = vpop.f32.mrf.mxu2 }
 0x18d   : > { %v2185_v31 = vpop.f32.mrf.mxu3 }
 0x193   : > { %v839_v43 = vpop.f32.mrf.mxu2 }
 0x197   : > { %v2187_v54 = vpop.f32.mrf.mxu3 }
 0x19b   : > { %v842_v44 = vpop.f32.mrf.mxu2 }
 0x1a0   : > { %v2189_v46 = vpop.f32.mrf.mxu3 }
 0x1a3   : > { %v845_v45 = vpop.f32.mrf.mxu2 }
 0x1a8   : > { %v2191_v11 = vpop.f32.mrf.mxu3 }
 0x1ab   : > { %v848_v3 = vpop.f32.mrf.mxu2 }
 0x1b5   : > { %v851_v48 = vpop.f32.mrf.mxu2 }
 0x1bd   : > { %v854_v51 = vpop.f32.mrf.mxu2 }
 0x1c5   : > { %v857_v52 = vpop.f32.mrf.mxu2 }
 0x1cd   : > { %v860_v53 = vpop.f32.mrf.mxu2 }
 0x1d5   : > { %v863_v50 = vpop.f32.mrf.mxu2 }
 0x1d9   : > { %884 = sbr.rel (%p1166_p7) target bundleno = 494 (0x1ee), region = 48 }
 0x1dd   : > { %v866_v40 = vpop.f32.mrf.mxu2 }
 0x1de   : > { %885 = vst [vmem:[#allocation2 + $0x30] sm:$0xff] %v833_v33 }
 0x1df   : > { %886 = vst [vmem:[#allocation2] sm:$0xff] %v836_v42 }
 0x1e0   : > { %887 = vst [vmem:[#allocation2 + $0x58] sm:$0xff] %v839_v43 }
 0x1e1   : > { %888 = vst [vmem:[#allocation2 + $0x18] sm:$0xff] %v842_v44 }
 0x1e2   : > { %889 = vst [vmem:[#allocation2 + $0x50] sm:$0xff] %v845_v45 }
 0x1e3   : > { %890 = vst [vmem:[#allocation2 + $0x68] sm:$0xff] %v848_v3 }
 0x1e4   : > { %891 = vst [vmem:[#allocation2 + $0x8] sm:$0xff] %v851_v48 }
 0x1e5   : > { %892 = vst [vmem:[#allocation2 + $0x48] sm:$0xff] %v854_v51 }
 0x1e6   : > { %893 = vst [vmem:[#allocation2 + $0x40] sm:$0xff] %v857_v52 }
 0x1e7   : > { %894 = vst [vmem:[#allocation2 + $0x20] sm:$0xff] %v860_v53 }
 0x1e8   : > { %895 = vst [vmem:[#allocation2 + $0x10] sm:$0xff] %v863_v50 }
 0x1e9   : > { %896 = vst [vmem:[#allocation2 + $0x38] sm:$0xff] %v866_v40 }
 0x1ea   : > { %897 = vst [vmem:[#allocation2 + $0x60] sm:$0xff] %v2185_v31 }
 0x1eb   : > { %898 = vst [vmem:[#allocation2 + $0x70] sm:$0xff] %v2187_v54 }
 0x1ec   : > { %899 = vst [vmem:[#allocation2 + $0x78] sm:$0xff] %v2189_v46 }
 0x1ed   : > { %900 = vst [vmem:[#allocation2 + $0x28] sm:$0xff] %v2191_v11 }
 0x1ee PF: > { %p1167_p9 = scmp.le.s32.totalorder %s1608_s18, 0 }
 0x1f0   : > { %904 = sbr.rel (%p1167_p9) target bundleno = 520 (0x208), region = 52 }
 0x1f5   : > { %v905_v55 = vld [vmem:[#allocation2 + $0x30] sm:$0xff]  ;;  %v906_v56 = vld [vmem:[#allocation2] sm:$0xff]  ;;  %v907_v57 = vld [vmem:[#allocation2 + $0x58] sm:$0xff] }
 0x1f6   : > { %v921_v39 = vadd.f32 %v905_v55, %v833_v33  ;;  %v922_v60 = vadd.f32 %v906_v56, %v836_v42  ;;  %v923_v28 = vadd.f32 %v907_v57, %v839_v43  ;;  %v908_v35 = vld [vmem:[#allocation2 + $0x18] sm:$0xff]  ;;  %v909_v61 = vld [vmem:[#allocation2 + $0x50] sm:$0xff]  ;;  %v910_v59 = vld [vmem:[#allocation2 + $0x68] sm:$0xff] }
 0x1f7   : > { %v924_v24 = vadd.f32 %v908_v35, %v842_v44  ;;  %v911_v62 = vld [vmem:[#allocation2 + $0x8] sm:$0xff]  ;;  %v925_v47 = vadd.f32 %v909_v61, %v845_v45  ;;  %v926_v0 = vadd.f32 %v910_v59, %v848_v3  ;;  %v913_v1 = vld [vmem:[#allocation2 + $0x40] sm:$0xff]  ;;  %v915_v8 = vld [vmem:[#allocation2 + $0x10] sm:$0xff] }
 0x1f8   : > { %937 = vst [vmem:[#allocation2 + $0x30] sm:$0xff] %v921_v39  ;;  %v912_v63 = vld [vmem:[#allocation2 + $0x48] sm:$0xff]  ;;  %v927_v2 = vadd.f32 %v911_v62, %v851_v48  ;;  %v914_v6 = vld [vmem:[#allocation2 + $0x20] sm:$0xff]  ;;  %v929_v10 = vadd.f32 %v913_v1, %v857_v52  ;;  %v916_v13 = vld [vmem:[#allocation2 + $0x38] sm:$0xff]  ;;  %v931_v16 = vadd.f32 %v915_v8, %v863_v50 }
 0x1f9   : > { %938 = vst [vmem:[#allocation2] sm:$0xff] %v922_v60  ;;  %v928_v7 = vadd.f32 %v912_v63, %v854_v51  ;;  %v930_v14 = vadd.f32 %v914_v6, %v860_v53  ;;  %v917_v58 = vld [vmem:[#allocation2 + $0x60] sm:$0xff]  ;;  %v918_v4 = vld [vmem:[#allocation2 + $0x70] sm:$0xff]  ;;  %v932_v18 = vadd.f32 %v916_v13, %v866_v40  ;;  %v919_v19 = vld [vmem:[#allocation2 + $0x78] sm:$0xff] }
 0x1fa   : > { %939 = vst [vmem:[#allocation2 + $0x58] sm:$0xff] %v923_v28  ;;  %v933_v49 = vadd.f32 %v917_v58, %v2185_v31  ;;  %v920_v20 = vld [vmem:[#allocation2 + $0x28] sm:$0xff]  ;;  %v934_v21 = vadd.f32 %v918_v4, %v2187_v54  ;;  %v935_v23 = vadd.f32 %v919_v19, %v2189_v46 }
 0x1fb   : > { %940 = vst [vmem:[#allocation2 + $0x18] sm:$0xff] %v924_v24  ;;  %v936_v22 = vadd.f32 %v920_v20, %v2191_v11 }
 0x1fc   : > { %941 = vst [vmem:[#allocation2 + $0x50] sm:$0xff] %v925_v47 }
 0x1fd   : > { %942 = vst [vmem:[#allocation2 + $0x68] sm:$0xff] %v926_v0 }
 0x1fe   : > { %943 = vst [vmem:[#allocation2 + $0x8] sm:$0xff] %v927_v2 }
 0x1ff   : > { %944 = vst [vmem:[#allocation2 + $0x48] sm:$0xff] %v928_v7 }
 0x200   : > { %945 = vst [vmem:[#allocation2 + $0x40] sm:$0xff] %v929_v10 }
 0x201   : > { %946 = vst [vmem:[#allocation2 + $0x20] sm:$0xff] %v930_v14 }
 0x202   : > { %947 = vst [vmem:[#allocation2 + $0x10] sm:$0xff] %v931_v16 }
 0x203   : > { %948 = vst [vmem:[#allocation2 + $0x38] sm:$0xff] %v932_v18 }
 0x204   : > { %949 = vst [vmem:[#allocation2 + $0x60] sm:$0xff] %v933_v49 }
 0x205   : > { %950 = vst [vmem:[#allocation2 + $0x70] sm:$0xff] %v934_v21 }
 0x206   : > { %951 = vst [vmem:[#allocation2 + $0x78] sm:$0xff] %v935_v23 }
 0x207   : > { %952 = vst [vmem:[#allocation2 + $0x28] sm:$0xff] %v936_v22 }
 0x208 PF: > { %p1168_p12 = scmp.ne.s32.totalorder %s1608_s18, 3 }
 0x20a   : > { %956 = sbr.rel (%p1168_p12) target bundleno = 544 (0x220), region = 56 }
 0x20f   : > { %v957_v26 = vld [vmem:[#allocation2 + $0x30] sm:$0xff]  ;;  %v958_v9 = vld [vmem:[#allocation2] sm:$0xff]  ;;  %v959_v25 = vld [vmem:[#allocation2 + $0x58] sm:$0xff] }
 0x210   : > { %973 = vst [vmem:[%s2195_s11] sm:$0xff] %v957_v26  ;;  %v960_v27 = vld [vmem:[#allocation2 + $0x18] sm:$0xff]  ;;  %v961_v17 = vld [vmem:[#allocation2 + $0x50] sm:$0xff]  ;;  %v962_v15 = vld [vmem:[#allocation2 + $0x68] sm:$0xff] }
 0x211   : > { %974 = vst [vmem:[%s2195_s11 + $0x8] sm:$0xff] %v958_v9  ;;  %v963_v29 = vld [vmem:[#allocation2 + $0x8] sm:$0xff]  ;;  %v965_v5 = vld [vmem:[#allocation2 + $0x40] sm:$0xff]  ;;  %v967_v32 = vld [vmem:[#allocation2 + $0x10] sm:$0xff] }
 0x212   : > { %975 = vst [vmem:[%s2195_s11 + $0x10] sm:$0xff] %v959_v25  ;;  %v964_v30 = vld [vmem:[#allocation2 + $0x48] sm:$0xff]  ;;  %v966_v12 = vld [vmem:[#allocation2 + $0x20] sm:$0xff]  ;;  %v968_v36 = vld [vmem:[#allocation2 + $0x38] sm:$0xff] }
 0x213   : > { %976 = vst [vmem:[%s2195_s11 + $0x18] sm:$0xff] %v960_v27  ;;  %v969_v37 = vld [vmem:[#allocation2 + $0x60] sm:$0xff]  ;;  %v970_v38 = vld [vmem:[#allocation2 + $0x70] sm:$0xff]  ;;  %v971_v34 = vld [vmem:[#allocation2 + $0x78] sm:$0xff] }
 0x214   : > { %977 = vst [vmem:[%s2195_s11 + $0x20] sm:$0xff] %v961_v17  ;;  %v972_v41 = vld [vmem:[#allocation2 + $0x28] sm:$0xff] }
 0x215   : > { %978 = vst [vmem:[%s2195_s11 + $0x28] sm:$0xff] %v962_v15 }
 0x216   : > { %979 = vst [vmem:[%s2195_s11 + $0x30] sm:$0xff] %v963_v29 }
 0x217   : > { %980 = vst [vmem:[%s2195_s11 + $0x38] sm:$0xff] %v964_v30 }
 0x218   : > { %981 = vst [vmem:[%s2195_s11 + $0x40] sm:$0xff] %v965_v5 }
 0x219   : > { %982 = vst [vmem:[%s2195_s11 + $0x48] sm:$0xff] %v966_v12 }
 0x21a   : > { %983 = vst [vmem:[%s2195_s11 + $0x50] sm:$0xff] %v967_v32 }
 0x21b   : > { %984 = vst [vmem:[%s2195_s11 + $0x58] sm:$0xff] %v968_v36 }
 0x21c   : > { %985 = vst [vmem:[%s2195_s11 + $0x60] sm:$0xff] %v969_v37 }
 0x21d   : > { %986 = vst [vmem:[%s2195_s11 + $0x68] sm:$0xff] %v970_v38 }
 0x21e   : > { %987 = vst [vmem:[%s2195_s11 + $0x70] sm:$0xff] %v971_v34 }
 0x21f   : > { %988 = vst [vmem:[%s2195_s11 + $0x78] sm:$0xff] %v972_v41 }
 0x220 PF: > { %s2334_s18 = sld [smem:[#allocation15_spill]]  ;;  %s1002_s4 = sshll.u32 %s2195_s11, 4  ;;  %s1003_s4 = int_to_ptr.vmem [resolvable:$true] %s1002_s4 }
 0x221   : > { %s2336_s9 = sld [smem:[#allocation24_spill]]  ;;  %s990_s1 = scalar_lea.sflag [#allocation5], %s1826_s3 }
 0x226   : > { %s1177_s27 = sshll.u32 %s2334_s18, 7 }
 0x227   : > { %s1001_s28 = scalar_lea.hbm %s2336_s9, %s1177_s27  ;;  %s1518_s21 = scalar_lea.hbm %s2336_s9, 256 }
 0x228   : > { %s1004_s6 = sshll.u32 %s1001_s28, 4  ;;  %s1005_s6 = int_to_ptr.hbm [resolvable:$true] %s1004_s6 }
 0x229   : > { %s1512_s14 = sshra.s32 %s1005_s6, 4  ;;  %s1513_s14 = int_to_ptr.hbm [resolvable:$true] %s1512_s14 }
 0x22a   : > { %s1514_s15 = scalar_lea.hbm %s1513_s14, 128  ;;  %p1519_p6 = scmp.lt.s32.totalorder %s1513_s14, %s2336_s9 }
 0x22b   : > { %p1515_p3 = scmp.ne.s32.totalorder %s1513_s14, %s1514_s15  ;;  %p1520_p10 = scmp.lt.s32.totalorder %s1518_s21, %s1514_s15 }
 0x22d   : > { %p1516_p4 = pnand %p1515_p3, %p1793_p0  ;;  %p1521_p11 = por %p1520_p10, %p1519_p6 }
 0x22f   : > { %p1517_p5 = pneg %p1516_p4 }
 0x231   : > { %p1522_p1 = pnand %p1521_p11, %p1517_p5 }
 0x233   : > { %1525 = shalt.err (!%p1522_p1)
}
 0x234   : > { %s1630_s3 = smov 128   ;;  %s1631_s26 = smov 8  }
 0x235   : > { %1232 = dma.vmem_to_hbm [thread:$0]  (%p1793_p0), %s1003_s4, 2048, %s1005_s6, %s990_s1, %s1630_s3, %s1630_s3, %s1631_s26  }
 0x236 PF: > { %s2337_s7 = sld [smem:[#allocation14_spill]]  ;;  %p1249_p2 = scmp.ge.s32.totalorder %s1624_s22, 2 }
 0x238   : > { %p1245_p13 = pnand %p1249_p2, %p1800_p8 }
 0x23a   : > { %p1246_p7 = pneg %p1245_p13 }
 0x23c   : > { %s1019_s23 = sand.u32 1, %s2337_s7  }
 0x23d   : > { %s1020_s29 = scalar_lea.sflag [#allocation5], %s1019_s23 }
 0x23e   : > { %1579 = dma.done.wait (%p1246_p7), %s1020_s29, 2048  }
 0x23f   : > { %1581 = vsyncadd (%p1246_p7), %s1020_s29, 4294965248  ;;  %s22_s22 = sadd.s32 1, %s1624_s22   ;;  %s2339_s11 = sld [smem:[#allocation13_spill]] }
 0x240   : > { %p19_p9 = scmp.ge.s32.totalorder %s22_s22, 10   ;;  %s2340_s14 = sld [smem:[#allocation18_spill]] }
 0x241   : > { %s2341_s18 = sld [smem:[#allocation22_spill]]  ;;  %s2345_s12 = smov %s1588_s13 }
 0x242   : > { %s2342_s19 = sld [smem:[#allocation16_spill]]  ;;  %s2347_s15 = smov %s1600_s16 }
 0x243   : > { %s2343_s27 = sld [smem:[#allocation17_spill]]  ;;  %s2348_s16 = smov %s1604_s17 }
 0x244   : > { %s2344_s21 = sld [smem:[#allocation19_spill]] }
 0x245   : > { %s2346_s13 = smov %s2339_s11  ;;  %21 = sbr.rel (!%p19_p9) target bundleno = 14 (0xe), region = 113 }
 0x247   : > { %s2349_s17 = smov %s2341_s18  ;;  %s2350_s18 = smov %s1616_s20 }
 0x249   : > { %s2351_s20 = smov %s2343_s27 }
 0x24a   :  { %1026 = vsyncpa [#allocation4], 1 }
 0x24b   :  { %1028 = vsyncpa [#allocation4 + $0x1], 1 }
 0x24c   :  { %1029 = vsyncpa [#allocation7], 1 }
 0x24d   :  { %1031 = vsyncpa [#allocation7 + $0x1], 1 }
 0x24e   :  { %1032 = vsyncpa [#allocation5], 1 }
 0x24f   :  { %1034 = vsyncpa [#allocation5 + $0x1], 1 }

</bundles_post_ra>
